<compile_context>
chip_gen: v5e
topology: v5e:2x2
jax: 0.10.0
libtpu: 0.0.40
codegen_flags: <defaults>
</compile_context>

<pallas_src>
import jax
import jax.numpy as jnp
from jax.experimental import pallas as pl
from jax.experimental.pallas import tpu as pltpu

NEG_SLOPE = 0.01                        # F.leaky_relu default negative_slope
_TILE_VMEM_BUDGET = 32 * 1024 * 1024    # VMEM we allow the pipelined row tile to use
_VMEM_LIMIT_BYTES = 48 * 1024 * 1024    # scoped-VMEM limit (fits v5e/v6e/v7x physical)


# ----------------------------------------------------------------------------
# helpers
# ----------------------------------------------------------------------------
def _round_up(x, m):
    return (x + m - 1) // m * m


def _default_target_rows():
    """Per-generation row-tile target (sweep 4K-32K for peak; these are safe)."""
    try:
        kind = jax.devices()[0].device_kind.lower()
    except Exception:
        return 8192
    if "v6" in kind or "trillium" in kind:
        return 16384          # single TC, 128 MiB VMEM: biggest tile that fits wins
    if "v7" in kind:
        return 8192           # 2 TCs share the grid; only 64 MiB VMEM per TC
    return 8192               # v5e (16 MiB scoped default) and anything unknown


def _pick_tm(M, target_rows, n_in, n_hidden):
    """Largest row tile under the VMEM budget; even #grid steps for v7x megacore."""
    # Per-row VMEM per step: double-buffered f32 x block + in-kernel bf16 x copy
    # + ~8 live f32 (tm, n) intermediates + bf16 copies + double-buffered output.
    per_row = (2 * n_in * 4) + (n_in * 2) + (8 * n_hidden * 4) + (2 * n_hidden * 2) + 8
    cap = max(8, min(target_rows, _TILE_VMEM_BUDGET // per_row) // 8 * 8)
    if M <= 8:
        return M                              # one full-extent block
    n_steps = max(2, pl.cdiv(M, cap))
    if n_steps % 2:
        n_steps += 1                          # even step count -> both v7x TCs busy
    return min(cap, _round_up(pl.cdiv(M, n_steps), 8))


def _leaky_relu(x):
    return jnp.maximum(x, NEG_SLOPE * x)      # equivalent for slope in (0, 1)


# ----------------------------------------------------------------------------
# fused kernel: fc1 -> lrelu -> fc2 -> lrelu -> fc3 -> lrelu -> end -> sigmoid
# ----------------------------------------------------------------------------
def _similarity_kernel(x_ref, w1_ref, b1_ref, w2_ref, b2_ref,
                       w3_ref, b3_ref, w4_ref, b4_ref, o_ref):
    # fc1: (tm, 2n) @ (2n, n).  x arrives f32 straight from HBM (read once);
    # cast to bf16 for the MXU on the idle VPU slot, accumulate in f32.
    x = x_ref[...].astype(jnp.bfloat16)
    h = jnp.dot(x, w1_ref[...], preferred_element_type=jnp.float32)
    h = _leaky_relu(h + b1_ref[...])
    # fc2: (tm, n) @ (n, n)
    h = jnp.dot(h.astype(jnp.bfloat16), w2_ref[...],
                preferred_element_type=jnp.float32)
    h = _leaky_relu(h + b2_ref[...])
    # fc3: (tm, n) @ (n, n)
    h = jnp.dot(h.astype(jnp.bfloat16), w3_ref[...],
                preferred_element_type=jnp.float32)
    h = _leaky_relu(h + b3_ref[...])
    # end layer (n -> 1): VPU multiply + lane reduction in f32 (an (n,1) matmul
    # would waste the MXU on a 1-lane output).
    z = jnp.sum(h * w4_ref[...], axis=-1, keepdims=True) + b4_ref[...]
    # Numerically stable sigmoid on the EUP: sigmoid(z) = 0.5 * tanh(z/2) + 0.5
    o_ref[...] = 0.5 * jnp.tanh(0.5 * z) + 0.5


def similarity_net_forward(x, params, *, target_rows=None, interpret=False):
    """SimilarityNet forward.  x: (B, 2*n) f32  ->  (B, 1) f32 in [0, 1]."""
    M, K1 = x.shape
    n = params["w1"].shape[1]
    assert params["w1"].shape == (K1, n) and K1 == 2 * n

    if target_rows is None:
        target_rows = _default_target_rows()
    tm = _pick_tm(M, target_rows, K1, n)
    grid = (pl.cdiv(M, tm),)   # ragged last block: extra rows computed, writes masked

    # Weight panels are a few KB, so a one-time wrapper-side bf16 cast is free
    # and saves a per-step in-kernel cast; biases / end layer stay f32.
    w1 = params["w1"].astype(jnp.bfloat16)
    w2 = params["w2"].astype(jnp.bfloat16)
    w3 = params["w3"].astype(jnp.bfloat16)
    b1 = params["b1"].reshape(1, n).astype(jnp.float32)
    b2 = params["b2"].reshape(1, n).astype(jnp.float32)
    b3 = params["b3"].reshape(1, n).astype(jnp.float32)
    w4 = params["w4"].reshape(1, n).astype(jnp.float32)   # (n, 1) column -> row vector
    b4 = params["b4"].reshape(1, 1).astype(jnp.float32)

    const = lambda i: (0, 0)   # weights/biases: same resident block every step
    return pl.pallas_call(
        _similarity_kernel,
        out_shape=jax.ShapeDtypeStruct((M, 1), jnp.float32),
        grid_spec=pltpu.PrefetchScalarGridSpec(
            num_scalar_prefetch=0,
            grid=grid,
            in_specs=[
                pl.BlockSpec((tm, K1), lambda i: (i, 0)),   # x row tile (native f32)
                pl.BlockSpec((K1, n), const),               # w1
                pl.BlockSpec((1, n), const),                # b1
                pl.BlockSpec((n, n), const),                # w2
                pl.BlockSpec((1, n), const),                # b2
                pl.BlockSpec((n, n), const),                # w3
                pl.BlockSpec((1, n), const),                # b3
                pl.BlockSpec((1, n), const),                # w4 (row vector)
                pl.BlockSpec((1, 1), const),                # b4
            ],
            out_specs=pl.BlockSpec((tm, 1), lambda i: (i, 0)),
        ),
        compiler_params=pltpu.CompilerParams(
            dimension_semantics=("parallel",),
            vmem_limit_bytes=_VMEM_LIMIT_BYTES),
        interpret=interpret,
    )(x, w1, b1, w2, b2, w3, b3, w4, b4)


# ----------------------------------------------------------------------------
# deterministic synthetic parameters (PyTorch nn.Linear-style init, (in, out) layout)
# ----------------------------------------------------------------------------
def make_params(key, n_features=32):
    def linear(k, fan_in, fan_out):
        kw, kb = jax.random.split(k)
        bound = 1.0 / (fan_in ** 0.5)
        w = jax.random.uniform(kw, (fan_in, fan_out), jnp.float32, -bound, bound)
        b = jax.random.uniform(kb, (fan_out,), jnp.float32, -bound, bound)
        return w, b

    k1, k2, k3, k4 = jax.random.split(key, 4)
    w1, b1 = linear(k1, 2 * n_features, n_features)
    w2, b2 = linear(k2, n_features, n_features)
    w3, b3 = linear(k3, n_features, n_features)
    w4, b4 = linear(k4, n_features, 1)
    return dict(w1=w1, b1=b1, w2=w2, b2=b2, w3=w3, b3=b3, w4=w4, b4=b4)


# pure-JAX reference; cast_to_bf16=True mimics the kernel's bf16 MXU inputs
def similarity_net_ref(x, params, *, cast_to_bf16=False):
    rd = (lambda a: a.astype(jnp.bfloat16).astype(jnp.float32)) if cast_to_bf16 else (lambda a: a)
    mm = lambda a, b: jnp.dot(a, b, precision=jax.lax.Precision.HIGHEST)
    h = mm(rd(x), rd(params["w1"])) + params["b1"]
    h = jnp.where(h > 0, h, NEG_SLOPE * h)
    h = mm(rd(h), rd(params["w2"])) + params["b2"]
    h = jnp.where(h > 0, h, NEG_SLOPE * h)
    h = mm(rd(h), rd(params["w3"])) + params["b3"]
    h = jnp.where(h > 0, h, NEG_SLOPE * h)
    z = mm(h, params["w4"]) + params["b4"]
    return jax.nn.sigmoid(z)


# ----------------------------------------------------------------------------
if __name__ == "__main__":
    key = jax.random.PRNGKey(0)
    k_params, k_x = jax.random.split(key)

    n_model_features = 32
    batch = 64
    params = make_params(k_params, n_features=n_model_features)

    # SimilarityNet input: concatenated feature pair -> (B, 2 * n_model_features)
    x = jax.random.normal(k_x, (batch, 2 * n_model_features), jnp.float32)

    out = jax.block_until_ready(similarity_net_forward(x, params))
    assert out.shape == (batch, 1), out.shape
    assert bool(jnp.all(jnp.isfinite(out)))
    assert bool(jnp.all((out >= 0.0) & (out <= 1.0)))

    # Tight check vs a reference that mimics the kernel's bf16 MXU inputs,
    # loose check vs the pure-f32 reference (bf16 rounding of x / activations).
    ref_bf16 = similarity_net_ref(x, params, cast_to_bf16=True)
    ref_f32 = similarity_net_ref(x, params)
    assert bool(jnp.allclose(out, ref_bf16, atol=5e-3)), float(jnp.max(jnp.abs(out - ref_bf16)))
    assert bool(jnp.allclose(out, ref_f32, atol=5e-2)), float(jnp.max(jnp.abs(out - ref_f32)))

    # Ragged-batch path: cdiv grid with a masked partial last block.
    x_odd = x[:13]
    out_odd = jax.block_until_ready(similarity_net_forward(x_odd, params))
    assert out_odd.shape == (13, 1)
    assert bool(jnp.allclose(out_odd, out[:13], atol=1e-6))

    print("KERNEL_OK")
</pallas_src>

<mosaic_0001>
module attributes {stable_mosaic.version = 11 : i64} {
  func.func @_similarity_kernel(%arg0: i32, %arg1: memref<32x64xf32, #tpu.memory_space<vmem>>, %arg2: memref<64x32xbf16, #tpu.memory_space<vmem>>, %arg3: memref<1x32xf32, #tpu.memory_space<vmem>>, %arg4: memref<32x32xbf16, #tpu.memory_space<vmem>>, %arg5: memref<1x32xf32, #tpu.memory_space<vmem>>, %arg6: memref<32x32xbf16, #tpu.memory_space<vmem>>, %arg7: memref<1x32xf32, #tpu.memory_space<vmem>>, %arg8: memref<1x32xf32, #tpu.memory_space<vmem>>, %arg9: memref<1x1xf32, #tpu.memory_space<vmem>>, %arg10: memref<32x1xf32, #tpu.memory_space<vmem>>) attributes {dimension_semantics = [#tpu.dimension_semantics<parallel>], iteration_bounds = array<i64: 2>, scalar_prefetch = 0 : i64, scratch_operands = 0 : i64, tpu.core_type = #tpu.core_type<tc>, window_params = [{transform_indices = @transform_0, window_bounds = array<i64: 32, 64>}, {pipeline_mode = #tpu.pipeline_mode<synchronous>, transform_indices = @transform_1, window_bounds = array<i64: 64, 32>}, {pipeline_mode = #tpu.pipeline_mode<synchronous>, transform_indices = @transform_2, window_bounds = array<i64: 1, 32>}, {pipeline_mode = #tpu.pipeline_mode<synchronous>, transform_indices = @transform_3, window_bounds = array<i64: 32, 32>}, {pipeline_mode = #tpu.pipeline_mode<synchronous>, transform_indices = @transform_4, window_bounds = array<i64: 1, 32>}, {pipeline_mode = #tpu.pipeline_mode<synchronous>, transform_indices = @transform_5, window_bounds = array<i64: 32, 32>}, {pipeline_mode = #tpu.pipeline_mode<synchronous>, transform_indices = @transform_6, window_bounds = array<i64: 1, 32>}, {pipeline_mode = #tpu.pipeline_mode<synchronous>, transform_indices = @transform_7, window_bounds = array<i64: 1, 32>}, {pipeline_mode = #tpu.pipeline_mode<synchronous>, transform_indices = @transform_8, window_bounds = array<i64: 1, 1>}, {transform_indices = @transform_9, window_bounds = array<i64: 32, 1>}]} {
    %c0 = arith.constant 0 : index
    %c0_0 = arith.constant 0 : index
    %0 = vector.load %arg1[%c0, %c0_0] : memref<32x64xf32, #tpu.memory_space<vmem>>, vector<32x64xf32>
    %1 = arith.truncf %0 : vector<32x64xf32> to vector<32x64xbf16>
    %c0_1 = arith.constant 0 : index
    %c0_2 = arith.constant 0 : index
    %2 = vector.load %arg2[%c0_1, %c0_2] : memref<64x32xbf16, #tpu.memory_space<vmem>>, vector<64x32xbf16>
    %cst = arith.constant dense<0.000000e+00> : vector<32x32xf32>
    %3 = tpu.matmul %1, %2, %cst {dimension_numbers = #tpu.dot_dimension_numbers<[1], [0], [0], [1], [0, 0, 1, 1], [], []>} : vector<32x64xbf16>, vector<64x32xbf16>, vector<32x32xf32> -> vector<32x32xf32>
    %c0_3 = arith.constant 0 : index
    %c0_4 = arith.constant 0 : index
    %4 = vector.load %arg3[%c0_3, %c0_4] : memref<1x32xf32, #tpu.memory_space<vmem>>, vector<1x32xf32>
    %5 = vector.broadcast %4 : vector<1x32xf32> to vector<32x32xf32>
    %6 = arith.addf %3, %5 : vector<32x32xf32>
    %cst_5 = arith.constant 0.00999999977 : f32
    %7 = vector.broadcast %cst_5 : f32 to vector<32x32xf32>
    %8 = arith.mulf %7, %6 : vector<32x32xf32>
    %9 = arith.maximumf %6, %8 : vector<32x32xf32>
    %10 = arith.truncf %9 : vector<32x32xf32> to vector<32x32xbf16>
    %c0_6 = arith.constant 0 : index
    %c0_7 = arith.constant 0 : index
    %11 = vector.load %arg4[%c0_6, %c0_7] : memref<32x32xbf16, #tpu.memory_space<vmem>>, vector<32x32xbf16>
    %cst_8 = arith.constant dense<0.000000e+00> : vector<32x32xf32>
    %12 = tpu.matmul %10, %11, %cst_8 {dimension_numbers = #tpu.dot_dimension_numbers<[1], [0], [0], [1], [0, 0, 1, 1], [], []>} : vector<32x32xbf16>, vector<32x32xbf16>, vector<32x32xf32> -> vector<32x32xf32>
    %c0_9 = arith.constant 0 : index
    %c0_10 = arith.constant 0 : index
    %13 = vector.load %arg5[%c0_9, %c0_10] : memref<1x32xf32, #tpu.memory_space<vmem>>, vector<1x32xf32>
    %14 = vector.broadcast %13 : vector<1x32xf32> to vector<32x32xf32>
    %15 = arith.addf %12, %14 : vector<32x32xf32>
    %cst_11 = arith.constant 0.00999999977 : f32
    %16 = vector.broadcast %cst_11 : f32 to vector<32x32xf32>
    %17 = arith.mulf %16, %15 : vector<32x32xf32>
    %18 = arith.maximumf %15, %17 : vector<32x32xf32>
    %19 = arith.truncf %18 : vector<32x32xf32> to vector<32x32xbf16>
    %c0_12 = arith.constant 0 : index
    %c0_13 = arith.constant 0 : index
    %20 = vector.load %arg6[%c0_12, %c0_13] : memref<32x32xbf16, #tpu.memory_space<vmem>>, vector<32x32xbf16>
    %cst_14 = arith.constant dense<0.000000e+00> : vector<32x32xf32>
    %21 = tpu.matmul %19, %20, %cst_14 {dimension_numbers = #tpu.dot_dimension_numbers<[1], [0], [0], [1], [0, 0, 1, 1], [], []>} : vector<32x32xbf16>, vector<32x32xbf16>, vector<32x32xf32> -> vector<32x32xf32>
    %c0_15 = arith.constant 0 : index
    %c0_16 = arith.constant 0 : index
    %22 = vector.load %arg7[%c0_15, %c0_16] : memref<1x32xf32, #tpu.memory_space<vmem>>, vector<1x32xf32>
    %23 = vector.broadcast %22 : vector<1x32xf32> to vector<32x32xf32>
    %24 = arith.addf %21, %23 : vector<32x32xf32>
    %cst_17 = arith.constant 0.00999999977 : f32
    %25 = vector.broadcast %cst_17 : f32 to vector<32x32xf32>
    %26 = arith.mulf %25, %24 : vector<32x32xf32>
    %27 = arith.maximumf %24, %26 : vector<32x32xf32>
    %c0_18 = arith.constant 0 : index
    %c0_19 = arith.constant 0 : index
    %28 = vector.load %arg8[%c0_18, %c0_19] : memref<1x32xf32, #tpu.memory_space<vmem>>, vector<1x32xf32>
    %29 = vector.broadcast %28 : vector<1x32xf32> to vector<32x32xf32>
    %30 = arith.mulf %27, %29 : vector<32x32xf32>
    %cst_20 = arith.constant dense<0.000000e+00> : vector<32xf32>
    %31 = vector.multi_reduction <add>, %30, %cst_20 [1] : vector<32x32xf32> to vector<32xf32>
    %32 = vector.shape_cast %31 : vector<32xf32> to vector<32x1xf32>
    %c0_21 = arith.constant 0 : index
    %c0_22 = arith.constant 0 : index
    %33 = vector.load %arg9[%c0_21, %c0_22] : memref<1x1xf32, #tpu.memory_space<vmem>>, vector<1x1xf32>
    %34 = vector.broadcast %33 : vector<1x1xf32> to vector<32x1xf32>
    %35 = arith.addf %32, %34 : vector<32x1xf32>
    %cst_23 = arith.constant 5.000000e-01 : f32
    %36 = vector.broadcast %cst_23 : f32 to vector<32x1xf32>
    %37 = arith.mulf %36, %35 : vector<32x1xf32>
    %38 = math.tanh %37 : vector<32x1xf32>
    %cst_24 = arith.constant 5.000000e-01 : f32
    %39 = vector.broadcast %cst_24 : f32 to vector<32x1xf32>
    %40 = arith.mulf %39, %38 : vector<32x1xf32>
    %cst_25 = arith.constant 5.000000e-01 : f32
    %41 = vector.broadcast %cst_25 : f32 to vector<32x1xf32>
    %42 = arith.addf %40, %41 : vector<32x1xf32>
    %c0_26 = arith.constant 0 : index
    %c0_27 = arith.constant 0 : index
    %43 = vector.load %arg10[%c0_26, %c0_27] : memref<32x1xf32, #tpu.memory_space<vmem>>, vector<32x1xf32>
    tpu.vector_store %arg10[%c0_26, %c0_27], %42 {strides = array<i32>} : memref<32x1xf32, #tpu.memory_space<vmem>>, vector<32x1xf32>,
    return
  }
  func.func @transform_0(%arg0: i32) -> (i32, i32) {
    %c0_i32 = arith.constant 0 : i32
    %c0_i32_0 = arith.constant 0 : i32
    return %arg0, %c0_i32 : i32, i32
  }
  func.func @transform_1(%arg0: i32) -> (i32, i32) {
    %c0_i32 = arith.constant 0 : i32
    %c0_i32_0 = arith.constant 0 : i32
    %c0_i32_1 = arith.constant 0 : i32
    return %c0_i32, %c0_i32_0 : i32, i32
  }
  func.func @transform_2(%arg0: i32) -> (i32, i32) {
    %c0_i32 = arith.constant 0 : i32
    %c0_i32_0 = arith.constant 0 : i32
    %c0_i32_1 = arith.constant 0 : i32
    return %c0_i32, %c0_i32_0 : i32, i32
  }
  func.func @transform_3(%arg0: i32) -> (i32, i32) {
    %c0_i32 = arith.constant 0 : i32
    %c0_i32_0 = arith.constant 0 : i32
    %c0_i32_1 = arith.constant 0 : i32
    return %c0_i32, %c0_i32_0 : i32, i32
  }
  func.func @transform_4(%arg0: i32) -> (i32, i32) {
    %c0_i32 = arith.constant 0 : i32
    %c0_i32_0 = arith.constant 0 : i32
    %c0_i32_1 = arith.constant 0 : i32
    return %c0_i32, %c0_i32_0 : i32, i32
  }
  func.func @transform_5(%arg0: i32) -> (i32, i32) {
    %c0_i32 = arith.constant 0 : i32
    %c0_i32_0 = arith.constant 0 : i32
    %c0_i32_1 = arith.constant 0 : i32
    return %c0_i32, %c0_i32_0 : i32, i32
  }
  func.func @transform_6(%arg0: i32) -> (i32, i32) {
    %c0_i32 = arith.constant 0 : i32
    %c0_i32_0 = arith.constant 0 : i32
    %c0_i32_1 = arith.constant 0 : i32
    return %c0_i32, %c0_i32_0 : i32, i32
  }
  func.func @transform_7(%arg0: i32) -> (i32, i32) {
    %c0_i32 = arith.constant 0 : i32
    %c0_i32_0 = arith.constant 0 : i32
    %c0_i32_1 = arith.constant 0 : i32
    return %c0_i32, %c0_i32_0 : i32, i32
  }
  func.func @transform_8(%arg0: i32) -> (i32, i32) {
    %c0_i32 = arith.constant 0 : i32
    %c0_i32_0 = arith.constant 0 : i32
    %c0_i32_1 = arith.constant 0 : i32
    return %c0_i32, %c0_i32_0 : i32, i32
  }
  func.func @transform_9(%arg0: i32) -> (i32, i32) {
    %c0_i32 = arith.constant 0 : i32
    %c0_i32_0 = arith.constant 0 : i32
    return %arg0, %c0_i32 : i32, i32
  }
}

</mosaic_0001>

<bundles_post_ra>
// kernel: tpu_custom_call.1
= control target key start
LH: loop header
LB: loop body
LE: loop exit
PB: predicated region body
PF: predicated region fallthrough
CT: control target
= control target key end

     0   :  { %s1041_s0 = inlined_call_operand.hbm [shape: f32[64,64], index: 0, kind: input, shape index: {}]   ;;  %s1042_s1 = inlined_call_operand.vmem [shape: bf16[64,32], index: 1, kind: input, shape index: {}]   ;;  %s1043_s2 = inlined_call_operand.vmem [shape: f32[1,32], index: 2, kind: input, shape index: {}]   ;;  %s1044_s3 = inlined_call_operand.vmem [shape: bf16[32,32], index: 3, kind: input, shape index: {}]   ;;  %s1045_s4 = inlined_call_operand.vmem [shape: f32[1,32], index: 4, kind: input, shape index: {}]   ;;  %s1046_s5 = inlined_call_operand.vmem [shape: bf16[32,32], index: 5, kind: input, shape index: {}]   ;;  %s1047_s6 = inlined_call_operand.vmem [shape: f32[1,32], index: 6, kind: input, shape index: {}]   ;;  %s1048_s7 = inlined_call_operand.vmem [shape: f32[1,32], index: 7, kind: input, shape index: {}]   ;;  %s1049_s8 = inlined_call_operand.<no memory space> [shape: f32[1,1], index: 8, kind: input, shape index: {}]   ;;  %s1050_s9 = inlined_call_operand.vmem [shape: f32[64,1], index: 9, kind: output, shape index: {}]  }
   0x1   :  { %v14_v0 = vstv %s1049_s8 }
   0x2   :  { %15 = vst [vmem:[#allocation2] sm:$0x1] %v14_v0 }
   0x3   :  { %16 = vsyncpa [#allocation4], 0 }
   0x4   :  { %18 = vsyncpa [#allocation4 + $0x1], 0  ;;  %s902_s11 = smov 0   ;;  %s904_s12 = smov 0  }
   0x5   :  { %s906_s13 = smov 0   ;;  %s908_s14 = smov 0  }
   0x6 LB: > { %s663_s8 = sadd.s32 4294967295, %s845_s14   ;;  %s922_s15 = sadd.s32 1, %s845_s14   ;;  %s845_s14 = sphi %s908_s14, %s1057_s14   ;;  %s841_s13 = sphi %s906_s13, %s1056_s13   ;;  %s837_s12 = sphi %s904_s12, %s1055_s12   ;;  %s833_s11 = sphi %s902_s11, %s1054_s11  }
   0x7   : > { %s28_s16 = ssub.s32 %s845_s14, %s922_s15  ;;  %s31_s17 = sadd.s32 1, %s841_s13 }
   0x8   : > { %p29_p0 = scmp.eq.s32.totalorder %s28_s16, 0  ;;  %p38_p1 = scmp.ne.s32.totalorder %s841_s13, %s837_s12 }
   0x9   : > { %p39_p2 = scmp.eq.s32.totalorder %s845_s14, 0  ;;  %p44_p3 = scmp.ne.s32.totalorder %s837_s12, %s833_s11 }
   0xa   : > { %s932_s18 = scalar_select %p29_p0, %s841_s13, %s31_s17  }
   0xb   : > { %p934_p4 = por %p39_p2, %p38_p1  ;;  %p45_p5 = scmp.eq.s32.totalorder %s663_s8, 0 }
   0xc   : > { %p733_p6 = scmp.lt.s32.totalorder %s845_s14, 2  ;;  %s286_s21 = sand.u32 1, %s841_s13  }
   0xd   : > { %p941_p7 = por %p45_p5, %p44_p3  ;;  %s667_s22 = sshll.u32 %s286_s21, 5 }
   0xe   : > { %s714_s23 = sshll.u32 %s845_s14, 5  ;;  %s290_s27 = scalar_lea.vmem [#allocation3], %s667_s22 }
   0xf   : > { %s295_s26 = scalar_lea.hbm %s1041_s0, %s714_s23  ;;  %s298_s28 = sshll.u32 %s290_s27, 4  ;;  %s299_s28 = int_to_ptr.vmem [resolvable:$true] %s298_s28 }
  0x10   : > { %s296_s29 = sshll.u32 %s295_s26, 4  ;;  %p952_p8 = pnand %p733_p6, %p934_p4  ;;  %s297_s29 = int_to_ptr.hbm [resolvable:$true] %s296_s29 }
  0x11   : > { %p670_p9 = scmp.ge.s32.totalorder %s845_s14, 1  ;;  %s287_s10 = scalar_lea.sflag [#allocation4], %s286_s21 }
  0x12   : > { %s781_s11 = sshra.s32 %s297_s29, 4  ;;  %p785_p11 = pneg %p952_p8  ;;  %s782_s11 = int_to_ptr.hbm [resolvable:$true] %s781_s11 }
  0x13   : > { %s783_s16 = scalar_lea.hbm %s782_s11, 32  ;;  %s788_s23 = scalar_lea.hbm %s1041_s0, 64 }
  0x14   : > { %p784_p10 = scmp.ne.s32.totalorder %s782_s11, %s783_s16  ;;  %p789_p0 = scmp.lt.s32.totalorder %s782_s11, %s1041_s0 }
  0x15   : > { %p790_p1 = scmp.lt.s32.totalorder %s788_s23, %s783_s16 }
  0x16   : > { %p786_p12 = pnand %p785_p11, %p784_p10 }
  0x17   : > { %p791_p2 = por %p790_p1, %p789_p0 }
  0x18   : > { %p787_p13 = pneg %p786_p12 }
  0x1a   : > { %p792_p3 = pnand %p791_p2, %p787_p13 }
  0x1c   : > { %795 = shalt.err (!%p792_p3)
}
  0x1d   : > { %s847_s21 = smov 128   ;;  %s848_s25 = smov 8  }
  0x1e   : > { %732 = dma.hbm_to_vmem [thread:$0]  (!%p952_p8), %s297_s29, 512, %s299_s28, %s287_s10, %s847_s21, %s847_s21, %s848_s25  }
  0x1f   : > { %p306_p4 = scmp.lt.s32.totalorder %s845_s14, 3 }
  0x21   : > { %p307_p5 = pnand %p670_p9, %p306_p4 }
  0x22   : > { %s312_s26 = sand.u32 (!%p307_p5), 1, %s837_s12  }
  0x23   : > { %310 = sbr.rel (%p307_p5) target bundleno = 638 (0x27e), region = 56  ;;  %s671_s27 = sshll.u32 (!%p307_p5), %s312_s26, 5 }
  0x24   : > { %s313_s11 = scalar_lea.sflag (!%p307_p5), [#allocation4], %s312_s26  ;;  %s316_s16 = scalar_lea.vmem (!%p307_p5), [#allocation3], %s671_s27 }
  0x28   : > { %828 = dma.done.wait (%p941_p7), %s313_s11, 512  }
  0x29   : > { %830 = vsyncadd (%p941_p7), %s313_s11, 4294966784  ;;  %v718_v1 = vld [vmem:[%s1042_s1 + $0x18] sm:$0xff]  ;;  %v717_v2 = vld [vmem:[%s1042_s1 + $0x10] sm:$0xff]  ;;  %vm402_vm0 = vcmask 523264   ;;  %vm458_vm1 = vcmask 261120   ;;  %s672_s20 = sshll.u32 %s663_s8, 2 }
  0x2a   : > { %413 = vmatpush.bf16.msra.mxu0 %v718_v1  ;;  %723 = vmatpush.bf16.msra.mxu3 %v718_v1  ;;  %v716_v3 = vld [vmem:[%s1042_s1 + $0x8] sm:$0xff]  ;;  %v715_v4 = vld [vmem:[%s1042_s1] sm:$0xff]  ;;  %v362_v7 = vld [vmem:[%s316_s16 + $0x10] sm:$0xff]  ;;  %p354_p6 = scmp.lt.s32.totalorder %s672_s20, 7  ;;  %vm591_vm2 = vcmask 7168  }
  0x2b   : > { %v360_v5 = vld [vmem:[%s316_s16] sm:$0xff]  ;;  %v361_v6 = vld [vmem:[%s316_s16 + $0x8] sm:$0xff]  ;;  %v363_v8 = vld [vmem:[%s316_s16 + $0x18] sm:$0xff] }
  0x2c   : > { %v364_v9 = vpack.c.bf16 %v361_v6, %v360_v5  ;;  %v365_v10 = vpack.c.bf16 %v363_v8, %v362_v7  ;;  %v720_v11 = vld [vmem:[%s1044_s3 + $0x8] sm:$0xff]  ;;  %v719_v12 = vld [vmem:[%s1044_s3] sm:$0xff]  ;;  %s1059_s20 = smov (!%p354_p6, %s672_s20), 7 }
  0x2d   : > { %471 = vmatpush.bf16.msra.mxu1 %v720_v11  ;;  %v768_v14 = vld [vmem:[%s1043_s2] ss:$0 sm:$0xff]  ;;  %v722_v32 = vld [vmem:[%s1046_s5 + $0x8] sm:$0xff]  ;;  %s673_s24 = sshll.u32 %s1059_s20, 3 }
  0x2e   : > { %414 = vmatpush.bf16.msra.mxu0 %v717_v2  ;;  %724 = vmatpush.bf16.msra.mxu3 %v717_v2  ;;  %v721_v33 = vld [vmem:[%s1046_s5] sm:$0xff]  ;;  %s357_s26 = scalar_lea.vmem %s1050_s9, %s673_s24 }
  0x2f   : > { %526 = vmatpush.bf16.msra.mxu2 %v722_v32  ;;  %v769_v35 = vld [vmem:[%s1045_s4] ss:$0 sm:$0xff] }
  0x30   : > { %v770_v53 = vld [vmem:[%s1047_s6] ss:$0 sm:$0xff] }
  0x31   : > { %472 = vmatpush.bf16.msra.mxu1 %v719_v12  ;;  %v771_v57 = vld [vmem:[%s1048_s7] ss:$0 sm:$0xff] }
  0x32   : > { %415 = vmatpush.bf16.msra.mxu0 %v716_v3  ;;  %725 = vmatpush.bf16.msra.mxu3 %v716_v3 }
  0x33   : > { %527 = vmatpush.bf16.msra.mxu2 %v721_v33 }
  0x36   : > { %416 = vmatpush.bf16.msra.mxu0 %v715_v4  ;;  %726 = vmatpush.bf16.msra.mxu3 %v715_v4 }
  0x39   : > { %690 = vmatmul.msk.bf16.vlgmr.msra.gmra.mxu0 %vm402_vm0, %v364_v9  ;;  %691 = vmatmul.msk.bf16.vlgmr.msra.gmra.mxu3 %vm402_vm0, %v365_v10 }
  0xb6   : > { %v418_v13 = vpop.f32.mrf.mxu0 }
  0xb7   : > { %v419_v15 = vadd.f32 %v768_v14, %v418_v13 }
  0xb9   : > { %v428_v18 = vmul.f32 0.01, %v419_v15 }
  0xbb   : > { %v432_v21 = vmax.f32 %v419_v15, %v428_v18  ;;  %v772_v15 = vld [vmem:[#allocation2] ss:$0 sm:$0xff] }
  0xbc   : > { %v423_v16 = vpop.f32.mrf.mxu3 }
  0xbd   : > { %v424_v25 = vadd.f32 %v768_v14, %v423_v16 }
  0xbe   : > { %v420_v17 = vpop.f32.mrf.mxu0 }
  0xbf   : > { %v421_v19 = vadd.f32 %v768_v14, %v420_v17  ;;  %v430_v27 = vmul.f32 0.01, %v424_v25 }
  0xc1   : > { %v429_v20 = vmul.f32 0.01, %v421_v19  ;;  %v434_v29 = vmax.f32 %v424_v25, %v430_v27 }
  0xc3   : > { %v433_v22 = vmax.f32 %v421_v19, %v429_v20 }
  0xc4   : > { %v425_v24 = vpop.f32.mrf.mxu3 }
  0xc5   : > { %v436_v23 = vpack.c.bf16 %v433_v22, %v432_v21  ;;  %v426_v26 = vadd.f32 %v768_v14, %v425_v24 }
  0xc7   : > { %700 = vmatmul.msk.bf16.vlgmr.msra.gmra.mxu1 %vm458_vm1, %v436_v23  ;;  %v431_v28 = vmul.f32 0.01, %v426_v26 }
  0xc9   : > { %v435_v30 = vmax.f32 %v426_v26, %v431_v28 }
  0xcb   : > { %v437_v31 = vpack.c.bf16 %v435_v30, %v434_v29 }
  0xd7   : > { %701 = vmatmul.msk.bf16.gmra.mxu1 %vm458_vm1, %v437_v31 }
 0x144   : > { %v474_v34 = vpop.f32.mrf.mxu1 }
 0x145   : > { %v475_v36 = vadd.f32 %v769_v35, %v474_v34 }
 0x147   : > { %v484_v38 = vmul.f32 0.01, %v475_v36 }
 0x149   : > { %v488_v41 = vmax.f32 %v475_v36, %v484_v38 }
 0x14c   : > { %v476_v37 = vpop.f32.mrf.mxu1 }
 0x14d   : > { %v477_v39 = vadd.f32 %v769_v35, %v476_v37 }
 0x14f   : > { %v485_v40 = vmul.f32 0.01, %v477_v39 }
 0x151   : > { %v489_v42 = vmax.f32 %v477_v39, %v485_v40 }
 0x153   : > { %v492_v43 = vpack.c.bf16 %v489_v42, %v488_v41 }
 0x154   : > { %v479_v44 = vpop.f32.mrf.mxu1 }
 0x155   : > { %710 = vmatmul.msk.bf16.vlgmr.msra.gmra.mxu2 %vm458_vm1, %v492_v43  ;;  %v480_v45 = vadd.f32 %v769_v35, %v479_v44 }
 0x157   : > { %v486_v47 = vmul.f32 0.01, %v480_v45 }
 0x159   : > { %v490_v50 = vmax.f32 %v480_v45, %v486_v47 }
 0x15c   : > { %v481_v46 = vpop.f32.mrf.mxu1 }
 0x15d   : > { %v482_v48 = vadd.f32 %v769_v35, %v481_v46 }
 0x15f   : > { %v487_v49 = vmul.f32 0.01, %v482_v48 }
 0x161   : > { %v491_v51 = vmax.f32 %v482_v48, %v487_v49 }
 0x163   : > { %v493_v52 = vpack.c.bf16 %v491_v51, %v490_v50 }
 0x165   : > { %711 = vmatmul.msk.bf16.gmra.mxu2 %vm458_vm1, %v493_v52 }
 0x1d8   : > { %v529_v54 = vpop.f32.mrf.mxu2 }
 0x1d9   : > { %v530_v55 = vadd.f32 %v770_v53, %v529_v54 }
 0x1db   : > { %v539_v56 = vmul.f32 0.01, %v530_v55 }
 0x1dd   : > { %v543_v58 = vmax.f32 %v530_v55, %v539_v56 }
 0x1df   : > { %v551_v59 = vmul.f32 %v771_v57, %v543_v58 }
 0x1e0   : > { %v531_v60 = vpop.f32.mrf.mxu2 }
 0x1e1   : > { %v532_v61 = vadd.f32 %v770_v53, %v531_v60  ;;  %v555_v62 = vsel %vm458_vm1, %v551_v59, 0.0 }
 0x1e2   : > { %556 = vadd.xlane.f32.xlu0 %v555_v62 }
 0x1e3   : > { %v540_v63 = vmul.f32 0.01, %v532_v61 }
 0x1e5   : > { %v544_v0 = vmax.f32 %v532_v61, %v540_v63 }
 0x1e7   : > { %v552_v1 = vmul.f32 %v771_v57, %v544_v0 }
 0x1e8   : > { %v534_v2 = vpop.f32.mrf.mxu2 }
 0x1e9   : > { %v535_v3 = vadd.f32 %v770_v53, %v534_v2  ;;  %v558_v4 = vsel %vm458_vm1, %v552_v1, 0.0 }
 0x1ea   : > { %559 = vadd.xlane.f32.xlu0 %v558_v4 }
 0x1eb   : > { %v541_v5 = vmul.f32 0.01, %v535_v3 }
 0x1ed   : > { %v545_v6 = vmax.f32 %v535_v3, %v541_v5 }
 0x1ef   : > { %v553_v7 = vmul.f32 %v771_v57, %v545_v6 }
 0x1f0   : > { %v536_v8 = vpop.f32.mrf.mxu2 }
 0x1f1   : > { %v537_v9 = vadd.f32 %v770_v53, %v536_v8  ;;  %v561_v10 = vsel %vm458_vm1, %v553_v7, 0.0 }
 0x1f2   : > { %562 = vadd.xlane.f32.xlu1 %v561_v10 }
 0x1f3   : > { %v542_v11 = vmul.f32 0.01, %v537_v9 }
 0x1f5   : > { %v546_v12 = vmax.f32 %v537_v9, %v542_v11 }
 0x1f7   : > { %v554_v13 = vmul.f32 %v771_v57, %v546_v12 }
 0x1f9   : > { %v564_v14 = vsel %vm458_vm1, %v554_v13, 0.0 }
 0x1fa   : > { %565 = vadd.xlane.f32.xlu1 %v564_v14 }
 0x255   : > { %v557_v16 = vpop.xlane.xlu0 %556 }
 0x256   : > { %v571_v17 = vadd.f32 %v772_v15, %v557_v16 }
 0x258   : > { %v575_v18 = vmul.f32 0.5, %v571_v17 }
 0x25a   : > { %773 = vtanh.f32 %v575_v18 }
 0x25d   : > { %v560_v19 = vpop.xlane.xlu0 %559 }
 0x25e   : > { %v572_v20 = vadd.f32 %v772_v15, %v560_v19 }
 0x260   : > { %v774_v21 = vpop.eup %773  ;;  %v576_v22 = vmul.f32 0.5, %v572_v20 }
 0x261   : > { %v583_v23 = vmul.f32 0.5, %v774_v21 }
 0x262   : > { %775 = vtanh.f32 %v576_v22 }
 0x263   : > { %v587_v24 = vadd.f32 0.5, %v583_v23 }
 0x265   : > { %592 = vst.msk [vmem:[%s357_s26] sm:$0xff] %vm591_vm2, %v587_v24  ;;  %v563_v25 = vpop.xlane.xlu1 %562 }
 0x266   : > { %v573_v26 = vadd.f32 %v772_v15, %v563_v25 }
 0x268   : > { %v776_v27 = vpop.eup %775  ;;  %v577_v28 = vmul.f32 0.5, %v573_v26 }
 0x269   : > { %v584_v29 = vmul.f32 0.5, %v776_v27 }
 0x26a   : > { %777 = vtanh.f32 %v577_v28 }
 0x26b   : > { %v588_v30 = vadd.f32 0.5, %v584_v29 }
 0x26d   : > { %593 = vst.msk [vmem:[%s357_s26 + $0x8] sm:$0xff] %vm591_vm2, %v588_v30  ;;  %v566_v31 = vpop.xlane.xlu1 %565 }
 0x26e   : > { %v574_v32 = vadd.f32 %v772_v15, %v566_v31 }
 0x270   : > { %v778_v33 = vpop.eup %777  ;;  %v578_v34 = vmul.f32 0.5, %v574_v32 }
 0x271   : > { %v585_v35 = vmul.f32 0.5, %v778_v33 }
 0x272   : > { %779 = vtanh.f32 %v578_v34 }
 0x273   : > { %v589_v36 = vadd.f32 0.5, %v585_v35 }
 0x275   : > { %594 = vst.msk [vmem:[%s357_s26 + $0x10] sm:$0xff] %vm591_vm2, %v589_v36 }
 0x278   : > { %v780_v37 = vpop.eup %779 }
 0x279   : > { %v586_v38 = vmul.f32 0.5, %v780_v37 }
 0x27b   : > { %v590_v39 = vadd.f32 0.5, %v586_v38 }
 0x27d   : > { %595 = vst.msk [vmem:[%s357_s26 + $0x18] sm:$0xff] %vm591_vm2, %v590_v39 }
 0x27e PF: > { %p21_p7 = scmp.ge.s32.totalorder %s922_s15, 4   ;;  %s1054_s11 = smov %s837_s12 }
 0x27f   : > { %s1055_s12 = smov %s841_s13  ;;  %s1056_s13 = smov %s932_s18 }
 0x280   : > { %s1057_s14 = smov %s922_s15  ;;  %23 = sbr.rel (!%p21_p7) target bundleno = 6 (0x6), region = 96 }
 0x285   :  { %618 = vsyncpa [#allocation4], 1 }
 0x286   :  { %620 = vsyncpa [#allocation4 + $0x1], 1 }

</bundles_post_ra>
